<compile_context>
chip_gen: v6e
topology: v6e:2x2x1
jax: 0.10.0
libtpu: 0.0.40
codegen_flags: <defaults>
</compile_context>

<pallas_src>
from typing import Optional

import numpy as np
import jax
import jax.numpy as jnp
from jax.experimental import pallas as pl
from jax.experimental.pallas import tpu as pltpu


# ----------------------------- Pallas kernels -------------------------------

_LANE = 128
_SUBLANE = 8
_CHUNK = _SUBLANE * _LANE                  # 1024 elements: min dense slab unit
_TARGET_BLOCK_BYTES = 4 * 1024 * 1024      # ~4 MiB per grad tile (see header)


def _neg_scale_kernel_native(coeff_ref, g_ref, o_ref):
    # grad_input = -coeff * grad_output, computed in the grad's native dtype.
    c = coeff_ref[0]                                   # f32 scalar from SMEM
    o_ref[...] = g_ref[...] * (-c).astype(o_ref.dtype)


def _neg_scale_kernel_f32(coeff_ref, g_ref, o_ref):
    # Same, but upcast to f32 for the multiply (pre-v6 parts, no bf16 VALU).
    c = coeff_ref[0]
    o_ref[...] = (g_ref[...].astype(jnp.float32) * (-c)).astype(o_ref.dtype)


def _needs_f32_compute(dtype) -> bool:
    """True only for sub-32-bit grads on chips without a bf16 VALU (v5e/v4)."""
    if jnp.dtype(dtype).itemsize >= 4:
        return False
    try:
        kind = jax.devices()[0].device_kind.lower()
        return ("v5" in kind) or ("v4" in kind) or ("v3" in kind)
    except Exception:
        return True  # conservative: the f32 path is correct everywhere


def _backward_pallas(g, coeff):
    """grad_input = -coeff * g, tiled lane-dense Pallas kernel on the hot path."""
    orig_shape = g.shape
    total = int(np.prod(orig_shape)) if orig_shape else 1

    # Ragged shapes: a single fused XLA op is one read + one write over HBM,
    # strictly better than pad + kernel + slice.  The Pallas path below is
    # reserved for (8*128)-aligned slabs (the common case for big gradients).
    if total % _CHUNK != 0:
        return (g * (-jnp.asarray(coeff, jnp.float32)).astype(g.dtype)).astype(g.dtype)

    rows = total // _LANE                              # multiple of 8
    g2 = g.reshape(rows, _LANE)
    itemsize = jnp.dtype(g2.dtype).itemsize

    # Block rows: ~4 MiB per tile, multiple of 8, never larger than the slab.
    target_rows = max(_SUBLANE,
                      (_TARGET_BLOCK_BYTES // (_LANE * itemsize)) // _SUBLANE * _SUBLANE)
    block_rows = min(target_rows, rows)
    # Keep >= 2 blocks when possible so the parallel axis spans both v7x TCs.
    if block_rows == rows and rows >= 2 * _SUBLANE:
        block_rows = max(_SUBLANE, (rows // 2) // _SUBLANE * _SUBLANE)
    n_blocks = pl.cdiv(rows, block_rows)               # partial last block OK

    coeff_arr = jnp.asarray(coeff, jnp.float32).reshape(1)
    kernel = (_neg_scale_kernel_f32 if _needs_f32_compute(g2.dtype)
              else _neg_scale_kernel_native)

    out2 = pl.pallas_call(
        kernel,
        out_shape=jax.ShapeDtypeStruct(g2.shape, g2.dtype),
        grid_spec=pltpu.PrefetchScalarGridSpec(
            num_scalar_prefetch=0,
            grid=(n_blocks,),
            in_specs=[
                pl.BlockSpec(memory_space=pltpu.SMEM),                # coeff
                pl.BlockSpec((block_rows, _LANE), lambda i: (i, 0)),  # grad tile
            ],
            out_specs=pl.BlockSpec((block_rows, _LANE), lambda i: (i, 0)),
        ),
        compiler_params=pltpu.CompilerParams(
            dimension_semantics=("parallel",),         # 2-TC sharding on v7x
            vmem_limit_bytes=32 * 1024 * 1024,         # 4 buffers * 4 MiB = 16 MiB
        ),
        cost_estimate=pl.CostEstimate(
            flops=total,
            transcendentals=0,
            bytes_accessed=2 * total * itemsize,       # real traffic: read + write
        ),
        input_output_aliases={1: 0},                   # in-place over the cotangent
    )(coeff_arr, g2)

    return out2.reshape(orig_shape)


# ----------------------- custom_vjp: gradient reversal ----------------------

@jax.custom_vjp
def gradient_reverse(x, coeff):
    # Forward is identity in value (output = input * 1.0); no kernel / no copy.
    return x


def _grl_fwd(x, coeff):
    return x, coeff


def _grl_bwd(coeff, g):
    # coeff gets a zero cotangent (PyTorch returns None for it).
    return _backward_pallas(g, coeff), jnp.zeros_like(coeff)


gradient_reverse.defvjp(_grl_fwd, _grl_bwd)


# ------------------------ module-equivalent wrapper --------------------------

class WarmStartGradientReverseLayer:
    def __init__(self, alpha: Optional[float] = 1.0, lo: Optional[float] = 0.0,
                 hi: Optional[float] = 1.0, max_iters: Optional[int] = 1000.0,
                 auto_step: Optional[bool] = False):
        self.alpha = alpha
        self.lo = lo
        self.hi = hi
        self.iter_num = 0
        self.max_iters = max_iters
        self.auto_step = auto_step

    def _coeff(self) -> float:
        return float(
            2.0 * (self.hi - self.lo)
            / (1.0 + np.exp(-self.alpha * self.iter_num / self.max_iters))
            - (self.hi - self.lo) + self.lo
        )

    def __call__(self, x):
        # TODO(synk): iter_num / coeff schedule is host-side Python state (as in
        # the nn.Module); it is passed to the kernel as a traced f32 scalar so
        # changing it per step never triggers a recompile.
        coeff = jnp.float32(self._coeff())
        if self.auto_step:
            self.step()
        return gradient_reverse(x, coeff)

    def step(self):
        self.iter_num += 1


# ----------------------------------- main ------------------------------------

if __name__ == "__main__":
    key = jax.random.PRNGKey(0)
    x = jax.random.normal(key, (2, 4, 16, 16), dtype=jnp.float32)  # NCHW, 2048 elems

    # Forward pass (identity in value), auto_step=True.
    layer = WarmStartGradientReverseLayer(alpha=1.0, lo=0.0, hi=1.0,
                                          max_iters=1000, auto_step=True)
    y = jax.block_until_ready(layer(x))
    assert y.shape == x.shape and y.dtype == x.dtype
    np.testing.assert_allclose(np.asarray(y), np.asarray(x), rtol=0, atol=0)

    # Backward pass (Pallas path, aligned, 2 blocks): grad == -coeff everywhere.
    layer2 = WarmStartGradientReverseLayer(alpha=1.0, lo=0.0, hi=1.0,
                                           max_iters=1000, auto_step=False)
    layer2.iter_num = 500
    coeff_ref = layer2._coeff()

    grads = jax.grad(lambda a: jnp.sum(layer2(a)))(x)
    grads = jax.block_until_ready(grads)
    np.testing.assert_allclose(np.asarray(grads),
                               np.full(x.shape, -coeff_ref, np.float32),
                               rtol=1e-6, atol=1e-6)

    # Ragged shape -> fused XLA fallback (no pad/slice HBM passes).
    x_odd = jax.random.normal(jax.random.PRNGKey(1), (3, 5, 7), jnp.float32)
    grads_odd = jax.grad(lambda a: jnp.sum(layer2(a)))(x_odd)
    grads_odd = jax.block_until_ready(grads_odd)
    np.testing.assert_allclose(np.asarray(grads_odd),
                               np.full(x_odd.shape, -coeff_ref, np.float32),
                               rtol=1e-6, atol=1e-6)

    # bf16 gradients exercise the native-dtype kernel body (f32 path on v5e).
    x_bf16 = jax.random.normal(jax.random.PRNGKey(2), (2, 4, 16, 16), jnp.bfloat16)
    grads_bf16 = jax.grad(lambda a: jnp.sum(layer2(a).astype(jnp.float32)))(x_bf16)
    grads_bf16 = jax.block_until_ready(grads_bf16)
    np.testing.assert_allclose(np.asarray(grads_bf16, dtype=np.float32),
                               np.full(x_bf16.shape, -coeff_ref, np.float32),
                               rtol=2e-2, atol=2e-2)

    print("KERNEL_OK")
</pallas_src>

<mosaic_0001>
module attributes {stable_mosaic.version = 11 : i64} {
  func.func @_neg_scale_kernel_native(%arg0: i32, %arg1: memref<1xf32, #tpu.memory_space<smem>>, %arg2: memref<8x128xf32, #tpu.memory_space<vmem>>, %arg3: memref<8x128xf32, #tpu.memory_space<vmem>>) attributes {dimension_semantics = [#tpu.dimension_semantics<parallel>], iteration_bounds = array<i64: 2>, scalar_prefetch = 0 : i64, scratch_operands = 0 : i64, tpu.core_type = #tpu.core_type<tc>, window_params = [{transform_indices = @transform_0, window_bounds = array<i64: 1>}, {transform_indices = @transform_1, window_bounds = array<i64: 8, 128>}, {transform_indices = @transform_2, window_bounds = array<i64: 8, 128>}]} {
    %c0 = arith.constant 0 : index
    %0 = memref.load %arg1[%c0] : memref<1xf32, #tpu.memory_space<smem>>
    %c0_0 = arith.constant 0 : index
    %c0_1 = arith.constant 0 : index
    %1 = vector.load %arg2[%c0_0, %c0_1] : memref<8x128xf32, #tpu.memory_space<vmem>>, vector<8x128xf32>
    %cst = arith.constant 0.000000e+00 : f32
    %2 = arith.subf %cst, %0 : f32
    %3 = vector.broadcast %2 : f32 to vector<8x128xf32>
    %4 = arith.mulf %1, %3 : vector<8x128xf32>
    %c0_2 = arith.constant 0 : index
    %c0_3 = arith.constant 0 : index
    %5 = vector.load %arg3[%c0_2, %c0_3] : memref<8x128xf32, #tpu.memory_space<vmem>>, vector<8x128xf32>
    tpu.vector_store %arg3[%c0_2, %c0_3], %4 {strides = array<i32>} : memref<8x128xf32, #tpu.memory_space<vmem>>, vector<8x128xf32>,
    return
  }
  func.func @transform_0(%arg0: i32) -> i32 {
    %c0_i32 = arith.constant 0 : i32
    %c0_i32_0 = arith.constant 0 : i32
    return %c0_i32 : i32
  }
  func.func @transform_1(%arg0: i32) -> (i32, i32) {
    %c0_i32 = arith.constant 0 : i32
    %c0_i32_0 = arith.constant 0 : i32
    return %arg0, %c0_i32 : i32, i32
  }
  func.func @transform_2(%arg0: i32) -> (i32, i32) {
    %c0_i32 = arith.constant 0 : i32
    %c0_i32_0 = arith.constant 0 : i32
    return %arg0, %c0_i32 : i32, i32
  }
}

</mosaic_0001>

<bundles_post_ra>
// kernel: tpu_custom_call.1
= control target key start
LH: loop header
LB: loop body
LE: loop exit
PB: predicated region body
PF: predicated region fallthrough
CT: control target
= control target key end

     0   :  { %s563_s0 = inlined_call_operand.<no memory space> [shape: f32[1], index: 0, kind: input, shape index: {}]   ;;  %s564_s1 = inlined_call_operand.hbm [shape: f32[16,128], index: 1, kind: input, shape index: {}, may-alias: {1,2}]   ;;  %s565_s2 = inlined_call_operand.hbm [shape: f32[16,128], index: 2, kind: output, shape index: {}, may-alias: {1,2}]  }
   0x1   :  { %7 = sst [smem:[#allocation2]] %s563_s0 }
   0x2   :  { %8 = vsyncpa [#allocation4], 0 }
   0x3   :  { %10 = vsyncpa [#allocation4 + $0x1], 0 }
   0x4   :  { %11 = vsyncpa [#allocation5], 0 }
   0x5   :  { %13 = vsyncpa [#allocation5 + $0x1], 0  ;;  %s422_s11 = smov 0   ;;  %s424_s12 = smov 0  }
   0x6   :  { %s426_s13 = smov 0   ;;  %s428_s14 = smov 0  }
   0x7 LB: > { %s443_s0 = sadd.s32 4294967295, %s400_s14   ;;  %s250_s15 = sadd.s32 4294967294, %s400_s14   ;;  %s400_s14 = sphi %s428_s14, %s582_s14   ;;  %s396_s13 = sphi %s426_s13, %s581_s13   ;;  %s392_s12 = sphi %s424_s12, %s580_s12   ;;  %s388_s11 = sphi %s422_s11, %s579_s11  }
   0x8   : > { %s447_s16 = sadd.s32 1, %s400_s14   ;;  %s47_s17 = sadd.s32 1, %s396_s13 }
   0x9   : > { %s44_s18 = ssub.s32 %s400_s14, %s447_s16  ;;  %p54_p0 = scmp.ne.s32.totalorder %s396_s13, %s392_s12 }
   0xa   : > { %p45_p1 = scmp.eq.s32.totalorder %s44_s18, 0  ;;  %p55_p2 = scmp.eq.s32.totalorder %s400_s14, 0 }
   0xb   : > { %p60_p3 = scmp.ne.s32.totalorder %s392_s12, %s388_s11  ;;  %p61_p4 = scmp.eq.s32.totalorder %s443_s0, 0 }
   0xc   : > { %s459_s19 = scalar_select %p45_p1, %s396_s13, %s47_s17  }
   0xd   : > { %p461_p5 = por %p55_p2, %p54_p0  ;;  %p465_p6 = por %p61_p4, %p60_p3 }
   0xe   : > { %p84_p7 = scmp.eq.s32.totalorder %s443_s0, 1  ;;  %p90_p8 = scmp.eq.s32.totalorder %s250_s15, 1 }
   0xf   : > { %s569_s21 = scalar_select %p465_p6, 1, 0 }
  0x10   : > { %p274_p10 = scmp.lt.s32.totalorder %s400_s14, 2  ;;  %p472_p11 = por %p84_p7, %p54_p0 }
  0x11   : > { %p476_p12 = por %p90_p8, %p60_p3  ;;  %s113_s24 = sand.u32 1, %s396_s13  }
  0x12   : > { %s570_s22 = scalar_select %p472_p11, 1, 0 }
  0x13   : > { %s571_s23 = scalar_select %p476_p12, 1, 0 }
  0x14   : > { %s254_s25 = sshll.u32 %s400_s14, 7  ;;  %s253_s26 = sshll.u32 %s113_s24, 3 }
  0x15   : > { %s485_s29 = scalar_lea.hbm %s564_s1, %s254_s25  ;;  %s117_s30 = scalar_lea.vmem [#allocation3], %s253_s26 }
  0x16   : > { %s124_s3 = sshll.u32 %s117_s30, 4  ;;  %p489_p13 = pnand %p274_p10, %p461_p5  ;;  %s493_s3 = int_to_ptr.vmem [resolvable:$true] %s124_s3 }
  0x17   : > { %s114_s5 = scalar_lea.sflag [#allocation4], %s113_s24  ;;  %s308_s6 = scalar_lea.hbm %s485_s29, 128 }
  0x18   : > { %p309_p2 = scmp.ne.s32.totalorder %s485_s29, %s308_s6  ;;  %p310_p3 = pneg %p489_p13 }
  0x19   : > { %s313_s9 = scalar_lea.hbm %s564_s1, 256  ;;  %p314_p5 = scmp.lt.s32.totalorder %s485_s29, %s564_s1 }
  0x1a   : > { %p311_p4 = pnand %p310_p3, %p309_p2  ;;  %p315_p8 = scmp.lt.s32.totalorder %s313_s9, %s308_s6 }
  0x1c   : > { %p312_p7 = pneg %p311_p4  ;;  %p316_p10 = por %p315_p8, %p314_p5 }
  0x1e   : > { %p317_p9 = pnand %p316_p10, %p312_p7 }
  0x20   : > { %320 = shalt.err (!%p317_p9)
}
  0x21   : > { %s321_s17 = scalar_lea.vmem %s493_s3, 128  ;;  %s402_s18 = smov [#allocation3]  }
  0x22   : > { %p322_p0 = scmp.ne.s32.totalorder %s493_s3, %s321_s17  ;;  %s326_s20 = sshll.u32 %s402_s18, 4  ;;  %s327_s20 = int_to_ptr.vmem [resolvable:$false] %s326_s20 }
  0x23   : > { %s328_s24 = scalar_lea.vmem %s327_s20, 256  ;;  %p329_p4 = scmp.lt.s32.totalorder %s493_s3, %s327_s20 }
  0x24   : > { %p324_p1 = pnand %p322_p0, %p310_p3  ;;  %p330_p12 = scmp.lt.s32.totalorder %s328_s24, %s321_s17 }
  0x26   : > { %p325_p2 = pneg %p324_p1  ;;  %p331_p11 = por %p330_p12, %p329_p4 }
  0x28   : > { %p332_p6 = pnand %p331_p11, %p325_p2 }
  0x2a   : > { %335 = shalt.err (!%p332_p6)
}
  0x2b   : > { %269 = dma.hbm_to_vmem [thread:$0]  (!%p489_p13), %s485_s29, 128, %s493_s3, %s114_s5  }
  0x2c   : > { %p573_p9 = scmp.lt.s32.totalorder %s400_s14, 3  ;;  %p574_p7 = scmp.ge.s32.totalorder %s400_s14, 1 }
  0x2e   : > { %p130_p0 = pnand %p574_p7, %p573_p9 }
  0x2f   : > { %s520_s25 = sand.u32 (!%p130_p0), 1, %s392_s12   ;;  %p575_p6 = scmp.ne.s32.totalorder (!%p130_p0), %s569_s21, 0 }
  0x30   : > { %133 = sbr.rel (%p130_p0) target bundleno = 80 (0x50), region = 28  ;;  %s256_s26 = sshll.u32 (!%p130_p0), %s520_s25, 3 }
  0x31   : > { %s136_s27 = scalar_lea.sflag (!%p130_p0), [#allocation4], %s520_s25  ;;  %s139_s28 = scalar_lea.vmem (!%p130_p0), [#allocation3], %s256_s26 }
  0x35   : > { %379 = dma.done.wait (%p575_p6), %s136_s27, 128  }
  0x36   : > { %381 = vsyncadd (%p575_p6), %s136_s27, 4294967168  ;;  %s160_s29 = sld [smem:[#allocation2]]  ;;  %s159_s30 = scalar_lea.vmem [#allocation6], %s256_s26  ;;  %v161_v0 = vld [vmem:[%s139_s28] sm:$0xff] }
  0x37   : > { %s180_s3 = sshll.u32 %s159_s30, 4  ;;  %s259_s5 = sshll.u32 %s443_s0, 7  ;;  %s181_s3 = int_to_ptr.vmem [resolvable:$true] %s180_s3 }
  0x38   : > { %s178_s8 = scalar_lea.hbm %s565_s2, %s259_s5  ;;  %s167_s9 = scalar_lea.sflag [#allocation5], %s520_s25 }
  0x39   : > { %s336_s21 = scalar_lea.vmem %s181_s3, 128  ;;  %p576_p12 = scmp.ne.s32.totalorder %s570_s22, 0 }
  0x3a   : > { %p337_p11 = scmp.ne.s32.totalorder %s181_s3, %s336_s21  ;;  %s403_s10 = smov [#allocation6]  }
  0x3b   : > { %s340_s15 = sshll.u32 %s403_s10, 4  ;;  %s341_s15 = int_to_ptr.vmem [resolvable:$false] %s340_s15 }
  0x3c   : > { %s162_s4 = ssub.f32 0.0, %s160_s29  ;;  %p338_p13 = pnand %p337_p11, %p576_p12 }
  0x3d   : > { %s342_s17 = scalar_lea.vmem %s341_s15, 256  ;;  %p343_p3 = scmp.lt.s32.totalorder %s181_s3, %s341_s15 }
  0x3e   : > { %v163_v1 = vstv %s162_s4  ;;  %p339_p1 = pneg %p338_p13  ;;  %p344_p5 = scmp.lt.s32.totalorder %s342_s17, %s336_s21 }
  0x3f   : > { %v164_v2 = vmul.f32 %v163_v1, %v161_v0 }
  0x40   : > { %p345_p8 = por %p344_p5, %p343_p3 }
  0x41   : > { %165 = vst [vmem:[%s159_s30] sm:$0xff] %v164_v2 }
  0x42   : > { %p346_p10 = pnand %p345_p8, %p339_p1 }
  0x44   : > { %349 = shalt.err (!%p346_p10)
}
  0x45   : > { %s350_s0 = scalar_lea.hbm %s178_s8, 128  ;;  %s354_s24 = scalar_lea.hbm %s565_s2, 256 }
  0x46   : > { %p351_p2 = scmp.ne.s32.totalorder %s178_s8, %s350_s0  ;;  %p355_p7 = scmp.lt.s32.totalorder %s178_s8, %s565_s2 }
  0x47   : > { %p356_p0 = scmp.lt.s32.totalorder %s354_s24, %s350_s0 }
  0x48   : > { %p352_p4 = pnand %p351_p2, %p576_p12 }
  0x49   : > { %p357_p6 = por %p356_p0, %p355_p7 }
  0x4a   : > { %p353_p9 = pneg %p352_p4 }
  0x4c   : > { %p358_p11 = pnand %p357_p6, %p353_p9 }
  0x4e   : > { %361 = shalt.err (!%p358_p11)
}
  0x4f   : > { %264 = dma.vmem_to_hbm [thread:$0]  (%p576_p12), %s181_s3, 128, %s178_s8, %s167_s9  }
  0x50 PF: > { %s192_s27 = sand.u32 1, %s388_s11   ;;  %p577_p13 = scmp.ne.s32.totalorder %s571_s23, 0 }
  0x51   : > { %p578_p1 = scmp.ge.s32.totalorder %s400_s14, 2  ;;  %s193_s28 = scalar_lea.sflag [#allocation5], %s192_s27 }
  0x53   : > { %p271_p3 = pnand %p578_p1, %p577_p13 }
  0x55   : > { %p272_p5 = pneg %p271_p3 }
  0x57   : > { %383 = dma.done.wait (%p272_p5), %s193_s28, 128  }
  0x58   : > { %385 = vsyncadd (%p272_p5), %s193_s28, 4294967168  ;;  %p16_p8 = scmp.ge.s32.totalorder %s447_s16, 4   ;;  %s579_s11 = smov %s392_s12 }
  0x59   : > { %s580_s12 = smov %s396_s13  ;;  %s581_s13 = smov %s459_s19 }
  0x5a   : > { %s582_s14 = smov %s447_s16  ;;  %18 = sbr.rel (!%p16_p8) target bundleno = 7 (0x7), region = 73 }
  0x5f   :  { %198 = vsyncpa [#allocation4], 1 }
  0x60   :  { %200 = vsyncpa [#allocation4 + $0x1], 1 }
  0x61   :  { %201 = vsyncpa [#allocation5], 1 }
  0x62   :  { %203 = vsyncpa [#allocation5 + $0x1], 1 }

</bundles_post_ra>
